<compile_context>
chip_gen: v7x
topology: tpu7x:2x2x1
jax: 0.10.0
libtpu: 0.0.40
codegen_flags: <defaults>
</compile_context>

<pallas_src>
import functools

import jax
import jax.numpy as jnp
from jax.experimental import pallas as pl
from jax.experimental.pallas import tpu as pltpu


# ----------------------------- Pallas kernel ------------------------------- #
def _driver_kernel(x_ref, w0_ref, b0_ref, w1_ref, b1_ref, wt_ref, bt_ref,
                   out_ref, *, num_dense, num_feat, emb_dim):
    f32 = jnp.float32
    bf16 = jnp.bfloat16

    # ---- bottom dense MLP: (Linear + ReLU) x 2 ; bf16 MXU inputs, f32 accum.
    dense = x_ref[:, :num_dense]                                  # (TB, Nd) bf16
    h = jnp.dot(dense, w0_ref[...], preferred_element_type=f32) + b0_ref[...]
    h = jnp.maximum(h, 0.0)
    h = jnp.dot(h.astype(bf16), w1_ref[...],
                preferred_element_type=f32) + b1_ref[...]
    h = jnp.maximum(h, 0.0)                                       # (TB, m1) f32

    # ---- pairwise dot interactions on the VPU from the flat (TB, F*D) slab.
    # Single upcast of the embedding lanes to f32, then 6 tiny mul+reduce ops.
    emb = x_ref[:, num_dense:].astype(f32)                        # (TB, F*D) f32
    dots = []
    for i in range(num_feat):
        for j in range(i + 1, num_feat):                          # triu order
            ei = emb[:, i * emb_dim:(i + 1) * emb_dim]
            ej = emb[:, j * emb_dim:(j + 1) * emb_dim]
            dots.append(jnp.sum(ei * ej, axis=-1, keepdims=True))  # (TB, 1) f32

    # ---- top MLP: one lane-dense matmul against the pre-concatenated weight.
    # Single bf16 cast of the concatenated feature vector right before the
    # matmul (avoids per-term cast chatter on v5e's f32-only VPU).
    feats = jnp.concatenate([h] + dots, axis=-1)                  # (TB, m1+P) f32
    acc = jnp.dot(feats.astype(bf16), wt_ref[...],
                  preferred_element_type=f32) + bt_ref[...]
    out_ref[...] = acc.astype(out_ref.dtype)                      # bf16 store


# --------------------------- one-time param prep ---------------------------- #
def prepare_params(params):
    """Hoisted, one-time weight prep (bf16 casts + top-weight concat)."""
    bf16 = jnp.bfloat16
    f32 = jnp.float32
    w_top = jnp.concatenate([params["wt_dense"], params["wt_inter"]], axis=0)
    return {
        "w0": params["w0"].astype(bf16),
        "b0": params["b0"].astype(f32),
        "w1": params["w1"].astype(bf16),
        "b1": params["b1"].astype(f32),
        "w_top": w_top.astype(bf16),          # (m1 + num_pairs, 256)
        "bt": params["bt"].astype(f32),
        "tables": [t.astype(bf16) for t in params["tables"]],
    }


# ------------------------------- wrapper ------------------------------------ #
def driver_forward(dense, sparse_idx, prepped, *, tile_b=2048):
    """dense: (B, Nd) f32, sparse_idx: (B, F) int32, prepped = prepare_params(...)."""
    bf16 = jnp.bfloat16
    tables = prepped["tables"]
    F = len(tables)
    D = tables[0].shape[1]

    # TODO(synk): for production table sizes, fuse the embedding gather into the
    # kernel (PrefetchScalarGridSpec scalar-prefetch of sparse_idx + per-row DMA
    # from the HBM tables) instead of materializing the gathered rows in XLA.
    embs = jnp.concatenate(
        [tables[i][sparse_idx[:, i]] for i in range(F)], axis=1)   # (B, F*D) bf16

    # Pack dense features + flattened embeddings into ONE bf16 activation slab.
    x = jnp.concatenate([dense.astype(bf16), embs], axis=1)        # (B, Nd+F*D)

    B, num_dense = dense.shape
    in_width = num_dense + F * D
    m0 = prepped["w0"].shape[1]
    m1 = prepped["w1"].shape[1]
    top = prepped["bt"].shape[-1]
    num_pairs = F * (F - 1) // 2
    assert prepped["w_top"].shape == (m1 + num_pairs, top)

    tile_b = min(tile_b, B)
    assert B % tile_b == 0, (B, tile_b)
    nb = B // tile_b
    # For v7x megacore keep nb >= 2 (and even) so the "parallel" batch axis
    # splits across both TensorCores.

    weights = (prepped["w0"], prepped["b0"], prepped["w1"], prepped["b1"],
               prepped["w_top"], prepped["bt"])
    weight_bytes = int(sum(a.size * a.dtype.itemsize for a in weights))
    # Per-step VMEM: double-buffered packed input + bf16 output + resident
    # weights, with headroom; clamped to stay valid on v5e/v6e (128 MiB) and
    # v7x (64 MiB physical VMEM).
    step_bytes = tile_b * (in_width + top) * 2
    vmem_limit = int(min(48 << 20, max(8 << 20, 3 * step_bytes + 2 * weight_bytes)))

    flops = int(2 * B * (num_dense * m0 + m0 * m1 + num_pairs * D
                         + (m1 + num_pairs) * top))
    bytes_accessed = int(x.size * x.dtype.itemsize + weight_bytes + B * top * 2)

    const2 = lambda i: (0, 0)
    grid_spec = pltpu.PrefetchScalarGridSpec(
        num_scalar_prefetch=0,
        grid=(nb,),
        in_specs=[
            pl.BlockSpec((tile_b, in_width), lambda i: (i, 0)),    # packed acts
            # Weights / biases: constant index_map -> VMEM-resident across the
            # batch grid.  (pl.Buffered(1) could drop the unused second buffer;
            # left at the default for portability — the saving is a few KiB.)
            pl.BlockSpec((num_dense, m0), const2),                 # w0
            pl.BlockSpec((1, m0), const2),                         # b0
            pl.BlockSpec((m0, m1), const2),                        # w1
            pl.BlockSpec((1, m1), const2),                         # b1
            pl.BlockSpec((m1 + num_pairs, top), const2),           # w_top
            pl.BlockSpec((1, top), const2),                        # bt
        ],
        out_specs=pl.BlockSpec((tile_b, top), lambda i: (i, 0)),
    )

    kernel = functools.partial(_driver_kernel, num_dense=num_dense,
                               num_feat=F, emb_dim=D)
    return pl.pallas_call(
        kernel,
        out_shape=jax.ShapeDtypeStruct((B, top), jnp.bfloat16),
        grid_spec=grid_spec,
        compiler_params=pltpu.CompilerParams(
            dimension_semantics=("parallel",),
            vmem_limit_bytes=vmem_limit),
        cost_estimate=pl.CostEstimate(
            flops=flops, transcendentals=0, bytes_accessed=bytes_accessed),
    )(x, *weights)


# --------------------------- pure-JAX reference ----------------------------- #
def driver_reference(dense, sparse_idx, params):
    h = jnp.maximum(dense @ params["w0"] + params["b0"], 0.0)
    h = jnp.maximum(h @ params["w1"] + params["b1"], 0.0)
    embs = jnp.stack(
        [tab[sparse_idx[:, i]] for i, tab in enumerate(params["tables"])],
        axis=1)                                                    # (B, F, D)
    gram = jnp.einsum("bfd,bgd->bfg", embs, embs)
    F = embs.shape[1]
    iu, ju = jnp.triu_indices(F, k=1)
    interact = gram[:, iu, ju]                                     # (B, P)
    feats = jnp.concatenate([h, interact], axis=1)
    w_top = jnp.concatenate([params["wt_dense"], params["wt_inter"]], axis=0)
    return feats @ w_top + params["bt"]


# --------------------------------- main -------------------------------------- #
if __name__ == "__main__":
    # Model config (matches DriverModel(__init__) with interaction_type='dot')
    B = 32
    NUM_DENSE = 16
    MLP_DIMS = (32, 16)
    TABLE_SIZES = (10, 12, 14, 16)     # num_sparse_features (vocab per table)
    EMB_DIM = 8                        # embedding_dims[i] == 8 for all i
    F = len(TABLE_SIZES)
    NUM_PAIRS = F * (F - 1) // 2
    TOP_OUT = 256

    key = jax.random.PRNGKey(0)
    ks = jax.random.split(key, 16)

    def init(k, shape, scale=0.1):
        return (scale * jax.random.normal(k, shape)).astype(jnp.float32)

    params = {
        "w0": init(ks[0], (NUM_DENSE, MLP_DIMS[0])),
        "b0": init(ks[1], (1, MLP_DIMS[0])),
        "w1": init(ks[2], (MLP_DIMS[0], MLP_DIMS[1])),
        "b1": init(ks[3], (1, MLP_DIMS[1])),
        # top Linear weight split: rows for dense_out part and interact part
        "wt_dense": init(ks[4], (MLP_DIMS[1], TOP_OUT)),
        "wt_inter": init(ks[5], (NUM_PAIRS, TOP_OUT)),
        "bt": init(ks[6], (1, TOP_OUT)),
        "tables": [init(ks[7 + i], (TABLE_SIZES[i], EMB_DIM), scale=1.0)
                   for i in range(F)],
    }

    dense_features = init(ks[11], (B, NUM_DENSE), scale=1.0)
    sparse_features = jnp.stack(
        [jax.random.randint(ks[12 + i], (B,), 0, TABLE_SIZES[i])
         for i in range(F)], axis=1).astype(jnp.int32)             # (B, F)

    # One-time weight prep (hoisted out of the forward path).
    prepped = prepare_params(params)

    # tile_b=16 exercises the batch grid (nb=2, both v7x cores busy) at the
    # small test shapes; at production B use tile_b ~ 2048-4096.
    out = driver_forward(dense_features, sparse_features, prepped, tile_b=16)
    out = jax.block_until_ready(out)

    ref = driver_reference(dense_features, sparse_features, params)
    assert out.shape == (B, TOP_OUT), out.shape

    out_f32 = out.astype(jnp.float32)
    max_diff = float(jnp.max(jnp.abs(out_f32 - ref)))
    # bf16 activations/weights/output (f32 accumulation) vs f32 reference.
    assert jnp.allclose(out_f32, ref, atol=1e-1, rtol=1e-1), (
        "mismatch vs reference, max abs diff = " + str(max_diff))

    print("KERNEL_OK")
</pallas_src>

<mosaic_0001>
module attributes {stable_mosaic.version = 11 : i64} {
  func.func @_driver_kernel(%arg0: i32, %arg1: memref<16x48xbf16, #tpu.memory_space<vmem>>, %arg2: memref<16x32xbf16, #tpu.memory_space<vmem>>, %arg3: memref<1x32xf32, #tpu.memory_space<vmem>>, %arg4: memref<32x16xbf16, #tpu.memory_space<vmem>>, %arg5: memref<1x16xf32, #tpu.memory_space<vmem>>, %arg6: memref<22x256xbf16, #tpu.memory_space<vmem>>, %arg7: memref<1x256xf32, #tpu.memory_space<vmem>>, %arg8: memref<16x256xbf16, #tpu.memory_space<vmem>>) attributes {dimension_semantics = [#tpu.dimension_semantics<parallel>], iteration_bounds = array<i64: 2>, scalar_prefetch = 0 : i64, scratch_operands = 0 : i64, tpu.core_type = #tpu.core_type<tc>, window_params = [{transform_indices = @transform_0, window_bounds = array<i64: 16, 48>}, {pipeline_mode = #tpu.pipeline_mode<synchronous>, transform_indices = @transform_1, window_bounds = array<i64: 16, 32>}, {pipeline_mode = #tpu.pipeline_mode<synchronous>, transform_indices = @transform_2, window_bounds = array<i64: 1, 32>}, {pipeline_mode = #tpu.pipeline_mode<synchronous>, transform_indices = @transform_3, window_bounds = array<i64: 32, 16>}, {pipeline_mode = #tpu.pipeline_mode<synchronous>, transform_indices = @transform_4, window_bounds = array<i64: 1, 16>}, {pipeline_mode = #tpu.pipeline_mode<synchronous>, transform_indices = @transform_5, window_bounds = array<i64: 22, 256>}, {pipeline_mode = #tpu.pipeline_mode<synchronous>, transform_indices = @transform_6, window_bounds = array<i64: 1, 256>}, {transform_indices = @transform_7, window_bounds = array<i64: 16, 256>}]} {
    %c0 = arith.constant 0 : index
    %c0_0 = arith.constant 0 : index
    %0 = vector.load %arg1[%c0, %c0_0] : memref<16x48xbf16, #tpu.memory_space<vmem>>, vector<16x16xbf16>
    %c0_1 = arith.constant 0 : index
    %c0_2 = arith.constant 0 : index
    %1 = vector.load %arg2[%c0_1, %c0_2] : memref<16x32xbf16, #tpu.memory_space<vmem>>, vector<16x32xbf16>
    %cst = arith.constant dense<0.000000e+00> : vector<16x32xf32>
    %2 = tpu.matmul %0, %1, %cst {dimension_numbers = #tpu.dot_dimension_numbers<[1], [0], [0], [1], [0, 0, 1, 1], [], []>} : vector<16x16xbf16>, vector<16x32xbf16>, vector<16x32xf32> -> vector<16x32xf32>
    %c0_3 = arith.constant 0 : index
    %c0_4 = arith.constant 0 : index
    %3 = vector.load %arg3[%c0_3, %c0_4] : memref<1x32xf32, #tpu.memory_space<vmem>>, vector<1x32xf32>
    %4 = vector.broadcast %3 : vector<1x32xf32> to vector<16x32xf32>
    %5 = arith.addf %2, %4 : vector<16x32xf32>
    %cst_5 = arith.constant 0.000000e+00 : f32
    %6 = vector.broadcast %cst_5 : f32 to vector<16x32xf32>
    %7 = arith.maximumf %5, %6 : vector<16x32xf32>
    %8 = arith.truncf %7 : vector<16x32xf32> to vector<16x32xbf16>
    %c0_6 = arith.constant 0 : index
    %c0_7 = arith.constant 0 : index
    %9 = vector.load %arg4[%c0_6, %c0_7] : memref<32x16xbf16, #tpu.memory_space<vmem>>, vector<32x16xbf16>
    %cst_8 = arith.constant dense<0.000000e+00> : vector<16x16xf32>
    %10 = tpu.matmul %8, %9, %cst_8 {dimension_numbers = #tpu.dot_dimension_numbers<[1], [0], [0], [1], [0, 0, 1, 1], [], []>} : vector<16x32xbf16>, vector<32x16xbf16>, vector<16x16xf32> -> vector<16x16xf32>
    %c0_9 = arith.constant 0 : index
    %c0_10 = arith.constant 0 : index
    %11 = vector.load %arg5[%c0_9, %c0_10] : memref<1x16xf32, #tpu.memory_space<vmem>>, vector<1x16xf32>
    %12 = vector.broadcast %11 : vector<1x16xf32> to vector<16x16xf32>
    %13 = arith.addf %10, %12 : vector<16x16xf32>
    %cst_11 = arith.constant 0.000000e+00 : f32
    %14 = vector.broadcast %cst_11 : f32 to vector<16x16xf32>
    %15 = arith.maximumf %13, %14 : vector<16x16xf32>
    %c0_12 = arith.constant 0 : index
    %c16 = arith.constant 16 : index
    %16 = vector.load %arg1[%c0_12, %c16] : memref<16x48xbf16, #tpu.memory_space<vmem>>, vector<16x32xbf16>
    %17 = arith.extf %16 : vector<16x32xbf16> to vector<16x32xf32>
    %18 = vector.extract_strided_slice %17 {offsets = [0, 0], sizes = [16, 8], strides = [1, 1]} : vector<16x32xf32> to vector<16x8xf32>
    %19 = vector.extract_strided_slice %17 {offsets = [0, 8], sizes = [16, 8], strides = [1, 1]} : vector<16x32xf32> to vector<16x8xf32>
    %20 = arith.mulf %18, %19 : vector<16x8xf32>
    %cst_13 = arith.constant dense<0.000000e+00> : vector<16xf32>
    %21 = vector.multi_reduction <add>, %20, %cst_13 [1] : vector<16x8xf32> to vector<16xf32>
    %22 = vector.shape_cast %21 : vector<16xf32> to vector<16x1xf32>
    %23 = vector.extract_strided_slice %17 {offsets = [0, 0], sizes = [16, 8], strides = [1, 1]} : vector<16x32xf32> to vector<16x8xf32>
    %24 = vector.extract_strided_slice %17 {offsets = [0, 16], sizes = [16, 8], strides = [1, 1]} : vector<16x32xf32> to vector<16x8xf32>
    %25 = arith.mulf %23, %24 : vector<16x8xf32>
    %cst_14 = arith.constant dense<0.000000e+00> : vector<16xf32>
    %26 = vector.multi_reduction <add>, %25, %cst_14 [1] : vector<16x8xf32> to vector<16xf32>
    %27 = vector.shape_cast %26 : vector<16xf32> to vector<16x1xf32>
    %28 = vector.extract_strided_slice %17 {offsets = [0, 0], sizes = [16, 8], strides = [1, 1]} : vector<16x32xf32> to vector<16x8xf32>
    %29 = vector.extract_strided_slice %17 {offsets = [0, 24], sizes = [16, 8], strides = [1, 1]} : vector<16x32xf32> to vector<16x8xf32>
    %30 = arith.mulf %28, %29 : vector<16x8xf32>
    %cst_15 = arith.constant dense<0.000000e+00> : vector<16xf32>
    %31 = vector.multi_reduction <add>, %30, %cst_15 [1] : vector<16x8xf32> to vector<16xf32>
    %32 = vector.shape_cast %31 : vector<16xf32> to vector<16x1xf32>
    %33 = vector.extract_strided_slice %17 {offsets = [0, 8], sizes = [16, 8], strides = [1, 1]} : vector<16x32xf32> to vector<16x8xf32>
    %34 = vector.extract_strided_slice %17 {offsets = [0, 16], sizes = [16, 8], strides = [1, 1]} : vector<16x32xf32> to vector<16x8xf32>
    %35 = arith.mulf %33, %34 : vector<16x8xf32>
    %cst_16 = arith.constant dense<0.000000e+00> : vector<16xf32>
    %36 = vector.multi_reduction <add>, %35, %cst_16 [1] : vector<16x8xf32> to vector<16xf32>
    %37 = vector.shape_cast %36 : vector<16xf32> to vector<16x1xf32>
    %38 = vector.extract_strided_slice %17 {offsets = [0, 8], sizes = [16, 8], strides = [1, 1]} : vector<16x32xf32> to vector<16x8xf32>
    %39 = vector.extract_strided_slice %17 {offsets = [0, 24], sizes = [16, 8], strides = [1, 1]} : vector<16x32xf32> to vector<16x8xf32>
    %40 = arith.mulf %38, %39 : vector<16x8xf32>
    %cst_17 = arith.constant dense<0.000000e+00> : vector<16xf32>
    %41 = vector.multi_reduction <add>, %40, %cst_17 [1] : vector<16x8xf32> to vector<16xf32>
    %42 = vector.shape_cast %41 : vector<16xf32> to vector<16x1xf32>
    %43 = vector.extract_strided_slice %17 {offsets = [0, 16], sizes = [16, 8], strides = [1, 1]} : vector<16x32xf32> to vector<16x8xf32>
    %44 = vector.extract_strided_slice %17 {offsets = [0, 24], sizes = [16, 8], strides = [1, 1]} : vector<16x32xf32> to vector<16x8xf32>
    %45 = arith.mulf %43, %44 : vector<16x8xf32>
    %cst_18 = arith.constant dense<0.000000e+00> : vector<16xf32>
    %46 = vector.multi_reduction <add>, %45, %cst_18 [1] : vector<16x8xf32> to vector<16xf32>
    %47 = vector.shape_cast %46 : vector<16xf32> to vector<16x1xf32>
    %48 = tpu.concatenate %15, %22, %27, %32, %37, %42, %47 in 1 : vector<16x16xf32>, vector<16x1xf32>, vector<16x1xf32>, vector<16x1xf32>, vector<16x1xf32>, vector<16x1xf32>, vector<16x1xf32> -> vector<16x22xf32>
    %49 = arith.truncf %48 : vector<16x22xf32> to vector<16x22xbf16>
    %c0_19 = arith.constant 0 : index
    %c0_20 = arith.constant 0 : index
    %50 = vector.load %arg6[%c0_19, %c0_20] : memref<22x256xbf16, #tpu.memory_space<vmem>>, vector<22x256xbf16>
    %cst_21 = arith.constant dense<0.000000e+00> : vector<16x256xf32>
    %51 = tpu.matmul %49, %50, %cst_21 {dimension_numbers = #tpu.dot_dimension_numbers<[1], [0], [0], [1], [0, 0, 1, 1], [], []>} : vector<16x22xbf16>, vector<22x256xbf16>, vector<16x256xf32> -> vector<16x256xf32>
    %c0_22 = arith.constant 0 : index
    %c0_23 = arith.constant 0 : index
    %52 = vector.load %arg7[%c0_22, %c0_23] : memref<1x256xf32, #tpu.memory_space<vmem>>, vector<1x256xf32>
    %53 = vector.broadcast %52 : vector<1x256xf32> to vector<16x256xf32>
    %54 = arith.addf %51, %53 : vector<16x256xf32>
    %55 = arith.truncf %54 : vector<16x256xf32> to vector<16x256xbf16>
    %c0_24 = arith.constant 0 : index
    %c0_25 = arith.constant 0 : index
    %56 = vector.load %arg8[%c0_24, %c0_25] : memref<16x256xbf16, #tpu.memory_space<vmem>>, vector<16x256xbf16>
    tpu.vector_store %arg8[%c0_24, %c0_25], %55 {strides = array<i32>} : memref<16x256xbf16, #tpu.memory_space<vmem>>, vector<16x256xbf16>,
    return
  }
  func.func @transform_0(%arg0: i32) -> (i32, i32) {
    %c0_i32 = arith.constant 0 : i32
    %c0_i32_0 = arith.constant 0 : i32
    return %arg0, %c0_i32 : i32, i32
  }
  func.func @transform_1(%arg0: i32) -> (i32, i32) {
    %c0_i32 = arith.constant 0 : i32
    %c0_i32_0 = arith.constant 0 : i32
    %c0_i32_1 = arith.constant 0 : i32
    return %c0_i32, %c0_i32_0 : i32, i32
  }
  func.func @transform_2(%arg0: i32) -> (i32, i32) {
    %c0_i32 = arith.constant 0 : i32
    %c0_i32_0 = arith.constant 0 : i32
    %c0_i32_1 = arith.constant 0 : i32
    return %c0_i32, %c0_i32_0 : i32, i32
  }
  func.func @transform_3(%arg0: i32) -> (i32, i32) {
    %c0_i32 = arith.constant 0 : i32
    %c0_i32_0 = arith.constant 0 : i32
    %c0_i32_1 = arith.constant 0 : i32
    return %c0_i32, %c0_i32_0 : i32, i32
  }
  func.func @transform_4(%arg0: i32) -> (i32, i32) {
    %c0_i32 = arith.constant 0 : i32
    %c0_i32_0 = arith.constant 0 : i32
    %c0_i32_1 = arith.constant 0 : i32
    return %c0_i32, %c0_i32_0 : i32, i32
  }
  func.func @transform_5(%arg0: i32) -> (i32, i32) {
    %c0_i32 = arith.constant 0 : i32
    %c0_i32_0 = arith.constant 0 : i32
    %c0_i32_1 = arith.constant 0 : i32
    return %c0_i32, %c0_i32_0 : i32, i32
  }
  func.func @transform_6(%arg0: i32) -> (i32, i32) {
    %c0_i32 = arith.constant 0 : i32
    %c0_i32_0 = arith.constant 0 : i32
    %c0_i32_1 = arith.constant 0 : i32
    return %c0_i32, %c0_i32_0 : i32, i32
  }
  func.func @transform_7(%arg0: i32) -> (i32, i32) {
    %c0_i32 = arith.constant 0 : i32
    %c0_i32_0 = arith.constant 0 : i32
    return %arg0, %c0_i32 : i32, i32
  }
}

</mosaic_0001>

<bundles_post_ra>
// kernel: tpu_custom_call.1
= control target key start
LH: loop header
LB: loop body
LE: loop exit
PB: predicated region body
PF: predicated region fallthrough
CT: control target
= control target key end

     0   :  { %s1400_s0 = inlined_call_operand.vmem [shape: bf16[32,48], index: 0, kind: input, shape index: {}]   ;;  %s1401_s1 = inlined_call_operand.hbm [shape: bf16[16,32], index: 1, kind: input, shape index: {}]   ;;  %s1402_s2 = inlined_call_operand.hbm [shape: f32[1,32], index: 2, kind: input, shape index: {}]   ;;  %s1403_s3 = inlined_call_operand.vmem [shape: bf16[32,16], index: 3, kind: input, shape index: {}]   ;;  %s1404_s4 = inlined_call_operand.hbm [shape: f32[1,16], index: 4, kind: input, shape index: {}]   ;;  %s1405_s5 = inlined_call_operand.vmem [shape: bf16[22,256], index: 5, kind: input, shape index: {}]   ;;  %s1406_s6 = inlined_call_operand.vmem [shape: f32[1,256], index: 6, kind: input, shape index: {}]   ;;  %s1407_s7 = inlined_call_operand.hbm [shape: bf16[32,256], index: 7, kind: output, shape index: {}]  }
   0x1   :  { %1411 = sst [smem:[#allocation13_spill]] %s1402_s2 }
   0x2   :  { %12 = vsyncpa [#allocation3], 0 }
   0x3   :  { %13 = vsyncpa [#allocation6], 0 }
   0x4   :  { %14 = vsyncpa [#allocation4], 0 }
   0x5   :  { %16 = vsyncpa [#allocation4 + $0x1], 0  ;;  %s1167_s24 = smov 0   ;;  %s1169_s25 = smov 0  }
   0x6   :  { %s1171_s26 = smov 0   ;;  %s1173_s27 = smov 0  }
   0x7 LB: > { %s1188_s28 = sadd.s32 4294967295, %s1110_s27   ;;  %s792_s29 = sadd.s32 4294967294, %s1110_s27   ;;  %s1110_s27 = sphi %s1173_s27, %s1430_s27   ;;  %s1106_s26 = sphi %s1171_s26, %s1429_s26   ;;  %s1102_s25 = sphi %s1169_s25, %s1428_s25   ;;  %s1098_s24 = sphi %s1167_s24, %s1427_s24  }
   0x8   : > { %s1192_s30 = sadd.s32 1, %s1110_s27   ;;  %s181_s8 = sadd.s32 1, %s1106_s26 }
   0x9   : > { %s178_s9 = ssub.s32 %s1110_s27, %s1192_s30  ;;  %p191_p0 = scmp.ne.s32.totalorder %s1106_s26, %s1102_s25 }
   0xa   : > { %p179_p1 = scmp.eq.s32.totalorder %s178_s9, 0  ;;  %p192_p2 = scmp.eq.s32.totalorder %s1188_s28, 1 }
   0xb   : > { %p197_p3 = scmp.ne.s32.totalorder %s1102_s25, %s1098_s24  ;;  %p198_p4 = scmp.eq.s32.totalorder %s792_s29, 1 }
   0xc   : > { %s1203_s10 = scalar_select %p179_p1, %s1106_s26, %s181_s8  }
   0xd   : > { %p1205_p5 = por %p192_p2, %p191_p0  ;;  %p1209_p6 = por %p198_p4, %p197_p3 }
   0xe   : > { %1412 = sst [smem:[#allocation12_spill]] %s1203_s10  ;;  %p793_p7 = scmp.ge.s32.totalorder %s1110_s27, 1 }
   0xf   : > { %s1413_s11 = scalar_select %p1205_p5, 1, 0 }
  0x10   : > { %s1414_s12 = scalar_select %p1209_p6, 1, 0 }
  0x11   : > { %p205_p8 = scmp.lt.s32.totalorder %s1110_s27, 3  ;;  %p1408_p9 = scmp.eq.s32.totalorder %s1188_s28, 0 }
  0x12   : > { %s1112_s14 = smov [#allocation5]   ;;  %s1113_s16 = smov [#allocation2]  }
  0x13   : > { %p1216_p10 = pnand %p793_p7, %p205_p8  ;;  %s231_s15 = sshll.u32 %s1112_s14, 4  ;;  %s232_s15 = int_to_ptr.vmem [resolvable:$true] %s231_s15 }
  0x14   : > { %s217_s17 = sshll.u32 %s1113_s16, 4  ;;  %s1114_s19 = smov [#allocation7]   ;;  %s1228_s17 = int_to_ptr.vmem [resolvable:$true] %s217_s17 }
  0x15   : > { %s1415_s13 = scalar_select %p1216_p10, 1, 0 }
  0x16   : > { %p864_p11 = pneg %p1216_p10  ;;  %s1230_s20 = sshll.u32 %s1114_s19, 4  ;;  %s246_s20 = int_to_ptr.vmem [resolvable:$true] %s1230_s20 }
  0x17   : > { %s1417_s2 = sld [smem:[#allocation13_spill]] }
  0x18   : > { %p1224_p12 = pnand %p1408_p9, %p864_p11 }
  0x1a   : > { %p1240_p0 = pneg %p1224_p12 }
  0x1d   : > { %s956_s23 = scalar_lea.hbm %s1417_s2, 16 }
  0x1e   : > { %p957_p13 = scmp.ne.s32.totalorder %s1417_s2, %s956_s23  ;;  %p963_p3 = scmp.lt.u32.totalorder %s956_s23, %s1417_s2 }
  0x20   : > { %p959_p1 = pnand %p1240_p0, %p957_p13 }
  0x22   : > { %p960_p2 = pneg %p959_p1 }
  0x24   : > { %p965_p4 = pnand %p963_p3, %p960_p2 }
  0x26   : > { %968 = shalt.err (!%p965_p4)
}
  0x27   : > { %s969_s19 = scalar_lea.vmem %s232_s15, 16  ;;  %s976_s21 = scalar_lea.vmem %s232_s15, 32 }
  0x28   : > { %p970_p7 = scmp.ne.s32.totalorder %s232_s15, %s969_s19  ;;  %p977_p9 = scmp.lt.s32.totalorder %s232_s15, %s232_s15 }
  0x29   : > { %p978_p6 = scmp.lt.s32.totalorder %s976_s21, %s969_s19 }
  0x2a   : > { %p972_p8 = pnand %p970_p7, %p1240_p0 }
  0x2b   : > { %p979_p5 = por %p978_p6, %p977_p9 }
  0x2c   : > { %p973_p11 = pneg %p972_p8 }
  0x2e   : > { %p980_p10 = pnand %p979_p5, %p973_p11 }
  0x30   : > { %983 = shalt.err (!%p980_p10)
}
  0x31   : > { %870 = dma.hbm_to_vmem [thread:$0]  (!%p1224_p12), %s1417_s2, 16, %s232_s15, [#allocation6]  }
  0x32   : > { %s984_s14 = scalar_lea.hbm %s1401_s1, 128 }
  0x33   : > { %p985_p13 = scmp.ne.s32.totalorder %s1401_s1, %s984_s14  ;;  %p991_p5 = scmp.lt.u32.totalorder %s984_s14, %s1401_s1 }
  0x35   : > { %p987_p1 = pnand %p985_p13, %p1240_p0 }
  0x37   : > { %p988_p6 = pneg %p987_p1 }
  0x39   : > { %p993_p9 = pnand %p991_p5, %p988_p6 }
  0x3b   : > { %996 = shalt.err (!%p993_p9)
}
  0x3c   : > { %s997_s15 = scalar_lea.vmem %s1228_s17, 128  ;;  %p1005_p4 = scmp.lt.s32.totalorder %s1228_s17, %s1228_s17 }
  0x3d   : > { %p998_p10 = scmp.ne.s32.totalorder %s1228_s17, %s997_s15  ;;  %p1006_p7 = scmp.lt.s32.totalorder %s997_s15, %s997_s15 }
  0x3f   : > { %p1000_p2 = pnand %p998_p10, %p1240_p0  ;;  %p1007_p8 = por %p1006_p7, %p1005_p4 }
  0x41   : > { %p1001_p3 = pneg %p1000_p2 }
  0x43   : > { %p1008_p11 = pnand %p1007_p8, %p1001_p3 }
  0x45   : > { %1011 = shalt.err (!%p1008_p11)
}
  0x46   : > { %s1115_s10 = smov 64   ;;  %s1116_s22 = smov 4  }
  0x47   : > { %867 = dma.hbm_to_vmem [thread:$0]  (!%p1224_p12), %s1401_s1, 128, %s1228_s17, [#allocation3], %s1115_s10, %s1115_s10, %s1116_s22  }
  0x48   : > { %s1012_s16 = scalar_lea.hbm %s1404_s4, 16 }
  0x49   : > { %p1013_p13 = scmp.ne.s32.totalorder %s1404_s4, %s1012_s16  ;;  %p1019_p5 = scmp.lt.u32.totalorder %s1012_s16, %s1404_s4 }
  0x4b   : > { %p1015_p1 = pnand %p1013_p13, %p1240_p0 }
  0x4d   : > { %p1016_p6 = pneg %p1015_p1 }
  0x4f   : > { %p1021_p9 = pnand %p1019_p5, %p1016_p6 }
  0x51   : > { %1024 = shalt.err (!%p1021_p9)
}
  0x52   : > { %s1025_s29 = scalar_lea.vmem %s246_s20, 16  ;;  %s1032_s17 = scalar_lea.vmem %s246_s20, 32 }
  0x53   : > { %p1026_p10 = scmp.ne.s32.totalorder %s246_s20, %s1025_s29  ;;  %p1033_p4 = scmp.lt.s32.totalorder %s246_s20, %s246_s20 }
  0x54   : > { %p1034_p7 = scmp.lt.s32.totalorder %s1032_s17, %s1025_s29 }
  0x55   : > { %p1028_p2 = pnand %p1026_p10, %p1240_p0 }
  0x56   : > { %p1035_p8 = por %p1034_p7, %p1033_p4 }
  0x57   : > { %p1029_p3 = pneg %p1028_p2 }
  0x59   : > { %p1036_p11 = pnand %p1035_p8, %p1029_p3 }
  0x5b   : > { %1039 = shalt.err (!%p1036_p11)
}
  0x5c   : > { %873 = dma.hbm_to_vmem [thread:$0]  (!%p1224_p12), %s1404_s4, 16, %s246_s20, [#allocation6]  }
  0x5d   : > { %p1419_p13 = scmp.ne.s32.totalorder %s1415_s13, 0 }
  0x5e   : > { %p1420_p1 = scmp.eq.s32.totalorder (!%p1419_p13), %s1188_s28, 0 }
  0x5f   : > { %273 = sbr.rel (%p1419_p13) target bundleno = 794 (0x31a), region = 48 }
  0x66   : > { %1085 = dma.done.wait (%p1420_p1), [#allocation3], 128   ;;  %p1421_p0 = pmov %p1420_p1 }
  0x68   : > { %1087 = vsyncadd (%p1421_p0), [#allocation3], 4294967168  ;;  %p1422_p6 = pmov %p1421_p0 }
  0x69   : > { %p1423_p5 = pmov %p1421_p0 }
  0x6a   : > { %1089 = dma.done.wait (%p1422_p6), [#allocation6], 32  }
  0x6b   : > { %1091 = vsyncadd (%p1423_p5), [#allocation6], 4294967264  ;;  %s803_s2 = sshll.u32 %s1188_s28, 1  ;;  %v1117_v0 = vmov 0.0   ;;  %vm1118_vm0 = vmmov 0   ;;  %v946_v1 = vld [vmem:[#allocation2] sm:$0xff]  }
  0x6c   : > { %836 = vmatprep.subr.bf16.mxu0 %v1117_v0  ;;  %838 = vmatprep.mubr.msk.bf16.mxu0 %vm1118_vm0, %v1117_v0  ;;  %p314_p12 = scmp.lt.s32.totalorder %s803_s2, 3  ;;  %vm343_vm1 = vcmask 130048   ;;  %s1119_s23 = smov 120   ;;  %v948_v6 = vld [vmem:[%s1403_s3] sm:$0xff]   ;;  %v949_v7 = vld [vmem:[%s1403_s3 + $0x8] sm:$0xff]   ;;  %vm414_vm2 = vcmask 261120  }
  0x6d   : > { %842 = vmatprep.subr.bf16.mxu1 %v1117_v0  ;;  %846 = vmatprep.mubr.msk.bf16.mxu1 %vm1118_vm0, %v1117_v0  ;;  %s1120_s8 = smov 104   ;;  %s1121_s14 = smov 112   ;;  %v805_v23 = vld [vmem:[#allocation5] ss:$0 sm:$0xff]  ;;  %vm481_vm3 = vcmask 64512   ;;  %vm620_vm4 = vcmask 1042432  }
  0x6e   : > { %s1432_s2 = smov (!%p314_p12, %s803_s2), 3  ;;  %837 = vmatpush3.bf16.msra.mxu0 %v946_v1  ;;  %843 = vmatpush3.bf16.msra.mxu1 %v948_v6  ;;  %s1122_s29 = smov 96   ;;  %v952_v57 = vld [vmem:[%s1405_s5 + $0x4] ss:$8 sps:$4 sm:$0xff]   ;;  %v950_v58 = vld [vmem:[%s1405_s5] ss:$8 sps:$4 sm:$0xff]  }
  0x6f   : > { %s804_s13 = sshll.u32 %s1432_s2, 2  ;;  %844 = vmatprep.subr.bf16.mxu1 %v1117_v0  ;;  %627 = vmatprep.subr.bf16.mxu0 %v952_v57  ;;  %v588_v59 = vld [vmem:[%s1405_s5 + $0x10] sm:$0x77]  ;;  %v1123_v63 = vmov 0   ;;  %v809_v6 = vld [vmem:[#allocation7] ss:$0 sm:$0xff] }
  0x70   : > { %s317_s9 = scalar_lea.vmem %s1400_s0, %s804_s13  ;;  %v816_v60 = vcombine.high %v588_v59, %v588_v59  ;;  %v815_v61 = vcombine.low %v588_v59, %v588_v59  ;;  %vm570_vm5 = vcmask 138240   ;;  %vm573_vm6 = vcmask 146432   ;;  %s310_s20 = sand.u32 1, %s1102_s25  }
  0x71   : > { %v321_v2 = vld [vmem:[%s317_s9] sm:$0xff]   ;;  %vm576_vm7 = vcmask 154624   ;;  %vm579_vm8 = vcmask 162816   ;;  %vm582_vm9 = vcmask 171008   ;;  %vm616_vm10 = vcmask 179200   ;;  %s830_s19 = sshll.u32 %s1188_s28, 8 }
  0x72   : > { %v461_v3 = vunpack.c.l.bf16 %v321_v2  ;;  %v462_v4 = vunpack.c.h.bf16 %v321_v2  ;;  %839 = vmatmul.mubr.msk.bf16.vlgmr.msra.gmra.mrb[0].mxu0 %vm343_vm1, %v321_v2  ;;  %845 = vmatpush3.bf16.msra.mxu1 %v949_v7  ;;  %v622_v62 = vsel %vm620_vm4, %v815_v61, 0  ;;  %s1359_s17 = scalar_lea.sflag [#allocation4], %s310_s20  ;;  %p1424_p10 = scmp.ne.s32.totalorder %s1413_s11, 0 }
  0x73   : > { %628 = vmatpush1.bf16.msra.mxu0 %v950_v58  ;;  %659 = vmatprep.mubr.bf16.mxu0 %v1123_v63  ;;  %s1124_s10 = smov [#allocation8]  }
  0x74   : > { %v931_v5 = vpack.i.bf16 %v462_v4, %v461_v3  ;;  %817 = vmatprep.subr.msk.bf16.mxu0 %vm620_vm4, %v816_v60  ;;  %s1044_s22 = sshll.u32 %s1124_s10, 4  ;;  %s1045_s22 = int_to_ptr.vmem [resolvable:$false] %s1044_s22 }
  0x75   : > { %s1046_s2 = scalar_lea.vmem %s1045_s22, 512 }
  0x76   : > { %932 = vrot.lane.b32.xlu0 %v931_v5, %s1119_s23  ;;  %942 = vrot.lane.b32.xlu1 %v931_v5, %s1120_s8 }
  0x77   : > { %630 = vmatpush1.bf16.msra.mxu0 %v622_v62 }
  0x7a   : > { %937 = vrot.lane.b32.xlu0 %v931_v5, %s1121_s14 }
  0xe8   : > { %v933_v8 = vpop.permute.xlu0 %932  ;;  %v943_v11 = vpop.permute.xlu1 %942 }
  0xe9   : > { %v935_v9 = vunpack.i.h.bf16 %v933_v8  ;;  %v934_v10 = vunpack.i.l.bf16 %v933_v8  ;;  %v945_v17 = vunpack.i.h.bf16 %v943_v11  ;;  %v944_v18 = vunpack.i.l.bf16 %v943_v11 }
  0xeb   : > { %v472_v12 = vmul.f32 %v935_v9, %v462_v4  ;;  %v471_v13 = vmul.f32 %v934_v10, %v461_v3  ;;  %v517_v21 = vmul.f32 %v945_v17, %v462_v4  ;;  %v516_v22 = vmul.f32 %v944_v18, %v461_v3 }
  0xec   : > { %v938_v14 = vpop.permute.xlu0 %937 }
  0xed   : > { %v940_v15 = vunpack.i.h.bf16 %v938_v14  ;;  %v939_v16 = vunpack.i.l.bf16 %v938_v14  ;;  %477 = vrot.lane.b32.xlu0 %v472_v12, %s1121_s14  ;;  %475 = vrot.lane.b32.xlu1 %v471_v13, %s1121_s14 }
  0xef   : > { %v495_v19 = vmul.f32 %v940_v15, %v462_v4  ;;  %v494_v20 = vmul.f32 %v939_v16, %v461_v3 }
  0xf1   : > { %500 = vrot.lane.b32.xlu0 %v495_v19, %s1121_s14  ;;  %498 = vrot.lane.b32.xlu1 %v494_v20, %s1121_s14 }
  0xf5   : > { %522 = vrot.lane.b32.xlu0 %v517_v21, %s1121_s14  ;;  %520 = vrot.lane.b32.xlu1 %v516_v22, %s1121_s14 }
  0xf9   : > { %534 = vrot.lane.b32.xlu0 %v472_v12, %s1120_s8  ;;  %532 = vrot.lane.b32.xlu1 %v471_v13, %s1120_s8 }
  0xfd   : > { %546 = vrot.lane.b32.xlu0 %v495_v19, %s1120_s8  ;;  %544 = vrot.lane.b32.xlu1 %v494_v20, %s1120_s8  ;;  %s802_s8 = sshll.u32 %s310_s20, 4 }
  0xfe   : > { %s312_s14 = scalar_lea.vmem [#allocation8], %s802_s8 }
  0xff   : > { %s699_s16 = sshll.u32 %s312_s14, 4  ;;  %s1352_s16 = int_to_ptr.vmem [resolvable:$true] %s699_s16 }
 0x100   : > { %s1040_s28 = scalar_lea.vmem %s1352_s16, 256  ;;  %p1047_p4 = scmp.lt.s32.totalorder %s1352_s16, %s1045_s22 }
 0x101   : > { %558 = vrot.lane.b32.xlu0 %v472_v12, %s1122_s29  ;;  %556 = vrot.lane.b32.xlu1 %v471_v13, %s1122_s29  ;;  %s1357_s29 = scalar_lea.hbm %s1407_s7, %s830_s19  ;;  %p1041_p9 = scmp.ne.s32.totalorder %s1352_s16, %s1040_s28 }
 0x102   : > { %p1048_p7 = scmp.lt.s32.totalorder %s1046_s2, %s1040_s28 }
 0x103   : > { %p1042_p2 = pnand %p1041_p9, %p1424_p10 }
 0x104   : > { %p1049_p8 = por %p1048_p7, %p1047_p4 }
 0x105   : > { %p1043_p3 = pneg %p1042_p2 }
 0x107   : > { %p1050_p11 = pnand %p1049_p8, %p1043_p3 }
 0x145   : > { %v381_v24 = vpop.f32.mrb[0].mxu0 }
 0x146   : > { %v382_v25 = vadd.f32 %v805_v23, %v381_v24  ;;  %v840_v26 = vpop.f32.mrb[1].mxu0 }
 0x147   : > { %v384_v27 = vpop.f32.mrb[2].mxu0 }
 0x148   : > { %v385_v28 = vadd.f32 %v805_v23, %v384_v27  ;;  %v841_v29 = vpop.f32.mrb[3].mxu0  ;;  %v388_v30 = vmax.f32 %v382_v25, 0.0 }
 0x14a   : > { %v389_v31 = vmax.f32 %v385_v28, 0.0 }
 0x14c   : > { %v390_v32 = vpack.c.bf16 %v389_v31, %v388_v30 }
 0x14e   : > { %847 = vmatmul.mubr.msk.bf16.vlgmr.msra.gmra.mrb[0].mxu1 %vm414_vm2, %v390_v32 }
 0x15f   : > { %v478_v33 = vpop.permute.xlu0 %477  ;;  %v476_v34 = vpop.permute.xlu1 %475 }
 0x160   : > { %v485_v35 = vsel %vm481_vm3, %v478_v33, 0.0  ;;  %v482_v36 = vsel %vm481_vm3, %v476_v34, 0.0  ;;  %v591_v34 = vlaneseq }
 0x161   : > { %486 = vadd.xlane.f32.xlu0 %v485_v35  ;;  %483 = vadd.xlane.f32.xlu1 %v482_v36 }
 0x162   : > { %v592_v35 = vshrl.u32 %v591_v34, 7 }
 0x163   : > { %v501_v37 = vpop.permute.xlu0 %500  ;;  %v499_v38 = vpop.permute.xlu1 %498 }
 0x164   : > { %v507_v39 = vsel %vm481_vm3, %v501_v37, 0.0  ;;  %v504_v40 = vsel %vm481_vm3, %v499_v38, 0.0  ;;  %v593_v36 = vsub.s32 0, %v592_v35  ;;  %v589_v37 = vld [vmem:[%s1406_s6] sm:$0x3]  ;;  %v597_v38 = vsub.s32 1, %v592_v35 }
 0x165   : > { %508 = vadd.xlane.f32.xlu1 %v507_v39  ;;  %505 = vadd.xlane.f32.xlu0 %v504_v40 }
 0x166   : > { %v594_v39 = vrot.slane %v589_v37, %v593_v36  ;;  %v598_v40 = vrot.slane %v589_v37, %v597_v38 }
 0x167   : > { %v523_v41 = vpop.permute.xlu0 %522  ;;  %v521_v42 = vpop.permute.xlu1 %520 }
 0x168   : > { %v529_v43 = vsel %vm481_vm3, %v523_v41, 0.0  ;;  %v526_v44 = vsel %vm481_vm3, %v521_v42, 0.0 }
 0x169   : > { %530 = vadd.xlane.f32.xlu1 %v529_v43  ;;  %527 = vadd.xlane.f32.xlu0 %v526_v44 }
 0x16b   : > { %v535_v45 = vpop.permute.xlu0 %534  ;;  %v533_v46 = vpop.permute.xlu1 %532 }
 0x16c   : > { %v541_v47 = vsel %vm481_vm3, %v535_v45, 0.0  ;;  %v538_v48 = vsel %vm481_vm3, %v533_v46, 0.0 }
 0x16d   : > { %542 = vadd.xlane.f32.xlu1 %v541_v47  ;;  %539 = vadd.xlane.f32.xlu0 %v538_v48 }
 0x16f   : > { %v547_v49 = vpop.permute.xlu0 %546  ;;  %v545_v50 = vpop.permute.xlu1 %544 }
 0x170   : > { %v553_v51 = vsel %vm481_vm3, %v547_v49, 0.0  ;;  %v550_v52 = vsel %vm481_vm3, %v545_v50, 0.0 }
 0x171   : > { %554 = vadd.xlane.f32.xlu1 %v553_v51  ;;  %551 = vadd.xlane.f32.xlu0 %v550_v52 }
 0x173   : > { %v559_v53 = vpop.permute.xlu0 %558  ;;  %v557_v54 = vpop.permute.xlu1 %556 }
 0x174   : > { %v565_v55 = vsel %vm481_vm3, %v559_v53, 0.0  ;;  %v562_v56 = vsel %vm481_vm3, %v557_v54, 0.0 }
 0x175   : > { %566 = vadd.xlane.f32.xlu1 %v565_v55  ;;  %563 = vadd.xlane.f32.xlu0 %v562_v56 }
 0x1ee   : > { %v487_v0 = vpop.xlane.xlu0 %486  ;;  %v484_v1 = vpop.xlane.xlu1 %483 }
 0x1f2   : > { %v506_v2 = vpop.xlane.xlu0 %505  ;;  %v509_v3 = vpop.xlane.xlu1 %508 }
 0x1f6   : > { %v528_v4 = vpop.xlane.xlu0 %527  ;;  %v531_v5 = vpop.xlane.xlu1 %530 }
 0x1fa   : > { %v540_v7 = vpop.xlane.xlu0 %539  ;;  %v543_v8 = vpop.xlane.xlu1 %542 }
 0x1fe   : > { %v552_v16 = vpop.xlane.xlu0 %551  ;;  %v555_v17 = vpop.xlane.xlu1 %554 }
 0x202   : > { %v564_v28 = vpop.xlane.xlu0 %563  ;;  %v567_v29 = vpop.xlane.xlu1 %566 }
 0x221   : > { %v452_v9 = vpop.f32.mrb[0].mxu1 }
 0x222   : > { %v453_v10 = vadd.f32 %v809_v6, %v452_v9  ;;  %v848_v11 = vpop.f32.mrb[1].mxu1 }
 0x223   : > { %v455_v12 = vpop.f32.mrb[2].mxu1 }
 0x224   : > { %v459_v13 = vmax.f32 %v453_v10, 0.0  ;;  %v456_v14 = vadd.f32 %v809_v6, %v455_v12  ;;  %v849_v15 = vpop.f32.mrb[3].mxu1 }
 0x226   : > { %v568_v18 = vsel %vm343_vm1, %v459_v13, %v484_v1  ;;  %v460_v19 = vmax.f32 %v456_v14, 0.0 }
 0x227   : > { %v571_v20 = vsel %vm570_vm5, %v568_v18, %v506_v2 }
 0x228   : > { %v574_v21 = vsel %vm573_vm6, %v571_v20, %v528_v4  ;;  %v569_v22 = vsel %vm343_vm1, %v460_v19, %v487_v0 }
 0x229   : > { %v577_v23 = vsel %vm576_vm7, %v574_v21, %v540_v7  ;;  %v572_v24 = vsel %vm570_vm5, %v569_v22, %v509_v3 }
 0x22a   : > { %v580_v25 = vsel %vm579_vm8, %v577_v23, %v552_v16  ;;  %v575_v26 = vsel %vm573_vm6, %v572_v24, %v531_v5 }
 0x22b   : > { %v578_v27 = vsel %vm576_vm7, %v575_v26, %v543_v8  ;;  %v583_v31 = vsel %vm582_vm9, %v580_v25, %v564_v28 }
 0x22c   : > { %v581_v30 = vsel %vm579_vm8, %v578_v27, %v555_v17 }
 0x22d   : > { %v584_v32 = vsel %vm582_vm9, %v581_v30, %v567_v29 }
 0x22e   : > { %v585_v33 = vpack.c.bf16 %v584_v32, %v583_v31 }
 0x230   : > { %818 = vmatmul.mubr.msk.bf16.vlgmr.msra.gmra.mrb[4].mxu0 %vm616_vm10, %v585_v33 }
 0x303   : > { %v661_v41 = vpop.f32.mrb[4].mxu0 }
 0x304   : > { %v662_v42 = vadd.f32 %v661_v41, %v594_v39  ;;  %v663_v43 = vpop.f32.mrb[5].mxu0 }
 0x305   : > { %v664_v44 = vadd.f32 %v663_v43, %v598_v40  ;;  %v665_v45 = vpop.f32.mrb[6].mxu0 }
 0x306   : > { %v666_v46 = vadd.f32 %v665_v45, %v594_v39  ;;  %v667_v47 = vpop.f32.mrb[7].mxu0 }
 0x307   : > { %v827_v48 = vpack.c.bf16 %v664_v44, %v662_v42  ;;  %v668_v49 = vadd.f32 %v667_v47, %v598_v40 }
 0x309   : > { %682 = vst [vmem:[%s312_s14] sm:$0xff] %v827_v48  ;;  %v828_v50 = vpack.c.bf16 %v668_v49, %v666_v46 }
 0x30b   : > { %683 = vst [vmem:[%s312_s14 + $0x8] sm:$0xff] %v828_v50 }
 0x30c   : > { %1053 = shalt.err (!%p1050_p11)
}
 0x30d   : > { %s1054_s13 = scalar_lea.hbm %s1357_s29, 256  ;;  %s1058_s9 = scalar_lea.hbm %s1407_s7, 512 }
 0x30e   : > { %p1055_p13 = scmp.ne.s32.totalorder %s1357_s29, %s1054_s13  ;;  %p1059_p6 = scmp.lt.u32.totalorder %s1357_s29, %s1407_s7 }
 0x30f   : > { %p1060_p5 = scmp.lt.u32.totalorder %s1058_s9, %s1054_s13  ;;  %p1062_p9 = scmp.lt.u32.totalorder %s1054_s13, %s1357_s29 }
 0x310   : > { %p1056_p1 = pnand %p1055_p13, %p1424_p10 }
 0x311   : > { %p1061_p12 = por %p1060_p5, %p1059_p6 }
 0x312   : > { %p1057_p0 = pneg %p1056_p1 }
 0x313   : > { %p1063_p2 = por %p1062_p9, %p1061_p12 }
 0x315   : > { %p1064_p3 = pnand %p1063_p2, %p1057_p0 }
 0x317   : > { %1067 = shalt.err (!%p1064_p3)
}
 0x318   : > { %s1125_s14 = smov 128   ;;  %s1126_s19 = smov 8  }
 0x319   : > { %862 = dma.vmem_to_hbm [thread:$0]  (%p1424_p10), %s1352_s16, 256, %s1357_s29, %s1359_s17, %s1125_s14, %s1125_s14, %s1126_s19  }
 0x31a PF: > { %p884_p4 = scmp.ge.s32.totalorder %s1110_s27, 2  ;;  %s714_s21 = sand.u32 1, %s1098_s24  }
 0x31b   : > { %p1425_p7 = scmp.ne.s32.totalorder %s1414_s12, 0  ;;  %s715_s15 = scalar_lea.sflag [#allocation4], %s714_s21 }
 0x31d   : > { %p875_p8 = pnand %p884_p4, %p1425_p7 }
 0x31f   : > { %1093 = dma.done.wait (!%p875_p8), %s715_s15, 256  }
 0x320   : > { %1095 = vsyncadd (!%p875_p8), %s715_s15, 4294967040  ;;  %s1426_s28 = sld [smem:[#allocation12_spill]]  ;;  %p19_p11 = scmp.ge.s32.totalorder %s1192_s30, 4  }
 0x321   : > { %s1427_s24 = smov %s1102_s25  ;;  %s1428_s25 = smov %s1106_s26 }
 0x322   : > { %s1430_s27 = smov %s1192_s30  ;;  %21 = sbr.rel (!%p19_p11) target bundleno = 7 (0x7), region = 96 }
 0x326   : > { %s1429_s26 = smov %s1426_s28 }
 0x329   :  { %720 = vsyncpa [#allocation3], 1 }
 0x32a   :  { %722 = vsyncpa [#allocation3 + $0x1], 1 }
 0x32b   :  { %723 = vsyncpa [#allocation6], 1 }
 0x32c   :  { %724 = vsyncpa [#allocation4], 1 }
 0x32d   :  { %726 = vsyncpa [#allocation4 + $0x1], 1 }

</bundles_post_ra>
